<compile_context>
chip_gen: v7x
topology: tpu7x:2x2x1
jax: 0.10.0
libtpu: 0.0.40
codegen_flags: <defaults>
</compile_context>

<pallas_src>
import math
import jax
import jax.numpy as jnp
from jax.experimental import pallas as pl
from jax.experimental.pallas import tpu as pltpu


def _round_up(x, m):
    return ((x + m - 1) // m) * m


# ----------------------------------------------------------------------------
# mask construction (identical semantics to the PyTorch get_mask)
# ----------------------------------------------------------------------------
def get_mask(in_features, out_features, in_flow_features, mask_type=None):
    if mask_type == 'input':
        in_degrees = jnp.arange(in_features) % in_flow_features
    else:
        in_degrees = jnp.arange(in_features) % (in_flow_features - 1)
    if mask_type == 'output':
        out_degrees = jnp.arange(out_features) % in_flow_features - 1
    else:
        out_degrees = jnp.arange(out_features) % (in_flow_features - 1)
    # (out_features, in_features) float32 -- same as the torch version
    return (out_degrees[:, None] >= in_degrees[None, :]).astype(jnp.float32)


# ----------------------------------------------------------------------------
# Pallas kernel: one (TB, Dp) batch tile of the MADE 'direct' forward pass.
# Masks already folded into the (padded, transposed) weights; output layer is
# one fused matmul with lane-aligned m / a halves.
# ----------------------------------------------------------------------------
def made_kernel(x_ref,
                w1_ref, b1_ref,
                w2_ref, b2_ref,
                w3_ref, b3_ref,
                u_ref, logdet_ref):
    cdt = w1_ref.dtype                       # MXU input dtype (f32 or bf16)
    Dp = u_ref.shape[1]

    x_in = x_ref[...]                        # (TB, Dp), f32 or bf16 stream
    x = x_in.astype(jnp.float32)

    # joiner: masked linear D -> H
    h = jnp.dot(x_in.astype(cdt), w1_ref[...],
                preferred_element_type=jnp.float32) + b1_ref[...]
    h = jnp.maximum(h, 0.0)                  # ReLU in f32 (v5e-safe)

    # trunk hidden: masked linear H -> H
    h = jnp.dot(h.astype(cdt), w2_ref[...],
                preferred_element_type=jnp.float32) + b2_ref[...]
    h = jnp.maximum(h, 0.0)

    # trunk output: fused masked linear H -> 2D, lane-aligned m/a halves
    ma = jnp.dot(h.astype(cdt), w3_ref[...],
                 preferred_element_type=jnp.float32) + b3_ref[...]
    m = ma[:, :Dp]                           # static, 128-aligned slices
    a = ma[:, Dp:]

    u_ref[...] = ((x - m) * jnp.exp(-a)).astype(u_ref.dtype)

    # lane-dense logdet store: broadcast the per-row sum across 128 lanes,
    # wrapper keeps column 0 (avoids masked vst.msk partial stores)
    ld = -jnp.sum(a, axis=-1, keepdims=True)                 # (TB, 1)
    logdet_ref[...] = jnp.broadcast_to(ld, logdet_ref.shape)  # (TB, 128)


# ----------------------------------------------------------------------------
# wrapper: batch-tiled pallas_call with VMEM-resident, single-buffered weights
# ----------------------------------------------------------------------------
def made_forward(x, params, *, block_b=None):
    """x: (B, D) float32. params: dict from init_made_params (masks folded,
    dims padded to multiples of 128, weights transposed to (in, out))."""
    B, D = x.shape
    w1 = params['w1']
    Dp, Hp = w1.shape
    LD_W = 128  # lane-dense logdet block width

    # Batch tile: big enough to amortize per-step overhead and fill the MXU M
    # dim; multiple of 8 sublanes (512 is a multiple of 256/128 for v6e/v7x/v5e).
    if block_b is None:
        block_b = 512
    TB = block_b if B > block_b else B
    TB = max(8, _round_up(TB, 8))
    Bp = _round_up(B, TB)
    grid = (Bp // TB,)

    # stream x in the weight dtype (bf16 halves the only per-tile input DMA;
    # the kernel rounds to that dtype before the first matmul anyway)
    stream_dt = w1.dtype
    xp = jnp.pad(x.astype(stream_dt), ((0, Bp - B), (0, Dp - D)))

    weight_args = (params['w1'], params['b1'],
                   params['w2'], params['b2'],
                   params['w3'], params['b3'])

    def resident(arr):
        # full array, constant index_map -> VMEM-resident across the batch
        # grid; Buffered(1) => single copy (no pointless double buffer).
        nd = arr.ndim
        idx = lambda i, _nd=nd: (0,) * _nd
        try:
            return pl.BlockSpec(arr.shape, idx, pipeline_mode=pl.Buffered(1))
        except TypeError:  # very old BlockSpec signature fallback
            return pl.BlockSpec(arr.shape, idx)

    in_specs = [pl.BlockSpec((TB, Dp), lambda i: (i, 0))]       # x: streamed
    in_specs += [resident(a) for a in weight_args]              # weights: resident

    out_specs = (pl.BlockSpec((TB, Dp), lambda i: (i, 0)),      # u
                 pl.BlockSpec((TB, LD_W), lambda i: (i, 0)))    # logdet (lane-dense)
    out_shape = (jax.ShapeDtypeStruct((Bp, Dp), jnp.float32),
                 jax.ShapeDtypeStruct((Bp, LD_W), jnp.float32))

    # scheduler hint for XLA around the custom call
    flops = 2 * Bp * (Dp * Hp + Hp * Hp + Hp * 2 * Dp)
    w_bytes = sum(int(a.size) * a.dtype.itemsize for a in weight_args)
    x_bytes = int(xp.size) * xp.dtype.itemsize
    bytes_accessed = x_bytes + w_bytes + Bp * Dp * 4 + Bp * LD_W * 4
    cost = pl.CostEstimate(flops=flops, transcendentals=Bp * Dp,
                           bytes_accessed=bytes_accessed)

    # --- VMEM budget -------------------------------------------------------
    # resident weights are single-buffered (Buffered(1)); streamed x/u/logdet
    # tiles are double-buffered by the pipeline; add live intermediates.
    stream_bytes = 2 * (TB * Dp * xp.dtype.itemsize   # x in
                        + TB * Dp * 4                 # u out
                        + TB * LD_W * 4)              # logdet out
    live_bytes = 2 * TB * Hp * 4 + 2 * TB * 2 * Dp * 4
    need = w_bytes + stream_bytes + live_bytes

    try:
        vmem_cap = int(pltpu.get_tpu_info().vmem_capacity_bytes)
    except Exception:
        vmem_cap = 64 * 1024 * 1024            # conservative (v7x physical)
    vmem_ceiling = int(0.85 * vmem_cap)        # ~54 MiB on v7x, ~109 MiB on v5e/v6e

    vmem_limit = None
    if need > 16 * 1024 * 1024:                # only raise scoped limit if needed
        vmem_limit = min(int(1.25 * need), vmem_ceiling)
    # TODO(synk): for very large H on v7x (f32 w2 alone near the 64 MiB VMEM),
    # stream w2 in K-tiles over an extra "arbitrary" grid axis with an f32 VMEM
    # accumulator instead of keeping all weights resident (or force bf16 weights).

    compiler_params = pltpu.CompilerParams(
        dimension_semantics=("parallel",),     # batch tiles are independent
        vmem_limit_bytes=vmem_limit)

    u_full, ld_full = pl.pallas_call(
        made_kernel,
        out_shape=out_shape,
        grid=grid,
        in_specs=in_specs,
        out_specs=out_specs,
        compiler_params=compiler_params,
        cost_estimate=cost,
    )(xp, *weight_args)

    u = u_full[:B, :D]
    logdet = ld_full[:B, :1]
    return u, logdet


# ----------------------------------------------------------------------------
# parameter setup: PyTorch-Linear-style init, masks folded into the weights,
# weights transposed to (in, out), dims zero-padded to multiples of 128,
# output layer fused with lane-aligned m / a halves.
# ----------------------------------------------------------------------------
def init_made_params(key, num_inputs, num_hidden, weight_dtype=jnp.float32):
    D, H = num_inputs, num_hidden
    Dp, Hp = _round_up(D, 128), _round_up(H, 128)

    def linear_init(key, in_f, out_f):
        k_w, k_b = jax.random.split(key)
        bound = 1.0 / math.sqrt(in_f)
        w = jax.random.uniform(k_w, (out_f, in_f), jnp.float32, -bound, bound)
        b = jax.random.uniform(k_b, (out_f,), jnp.float32, -bound, bound)
        return w, b

    k1, k2, k3 = jax.random.split(key, 3)
    w1, b1 = linear_init(k1, D, H)           # joiner:        D  -> H
    w2, b2 = linear_init(k2, H, H)           # trunk hidden:  H  -> H
    w3, b3 = linear_init(k3, H, 2 * D)       # trunk output:  H  -> 2D

    input_mask = get_mask(D, H, D, mask_type='input')         # (H, D)
    hidden_mask = get_mask(H, H, D)                           # (H, H)
    output_mask = get_mask(H, 2 * D, D, mask_type='output')   # (2D, H)

    # fold static masks into the weights; transpose to (in, out)
    w1m = (w1 * input_mask).T                                  # (D, H)
    w2m = (w2 * hidden_mask).T                                 # (H, H)
    w3m = (w3 * output_mask).T                                 # (H, 2D)

    # zero-pad to lane/MXU-aligned shapes (zeros are exact: they contribute 0,
    # ReLU(0)=0, exp(-0)=1 with zero-padded x rows/cols => padded u/logdet = 0)
    w1p = jnp.zeros((Dp, Hp), jnp.float32).at[:D, :H].set(w1m)
    b1p = jnp.zeros((1, Hp), jnp.float32).at[0, :H].set(b1)
    w2p = jnp.zeros((Hp, Hp), jnp.float32).at[:H, :H].set(w2m)
    b2p = jnp.zeros((1, Hp), jnp.float32).at[0, :H].set(b2)

    # fused output layer: [ m-half | a-half ], each half Dp lanes wide
    w3p = jnp.zeros((Hp, 2 * Dp), jnp.float32)
    w3p = w3p.at[:H, :D].set(w3m[:, :D])            # m half
    w3p = w3p.at[:H, Dp:Dp + D].set(w3m[:, D:])     # a half
    b3p = jnp.zeros((1, 2 * Dp), jnp.float32)
    b3p = b3p.at[0, :D].set(b3[:D])
    b3p = b3p.at[0, Dp:Dp + D].set(b3[D:])

    cast = lambda w: w.astype(weight_dtype)
    return dict(w1=cast(w1p), b1=b1p,
                w2=cast(w2p), b2=b2p,
                w3=cast(w3p), b3=b3p)


# ----------------------------------------------------------------------------
# pure-JAX reference (same padded pre-masked weights, same rounding/casts)
# ----------------------------------------------------------------------------
def made_forward_ref(x, p):
    B, D = x.shape
    Dp, Hp = p['w1'].shape
    cdt = p['w1'].dtype
    f32 = lambda w: w.astype(jnp.float32)
    rt = lambda v: v.astype(cdt).astype(jnp.float32)   # mimic kernel-side rounding

    xp = jnp.pad(x, ((0, 0), (0, Dp - D)))
    xq = rt(xp)                                        # streamed/rounded x

    h = xq @ f32(p['w1']) + p['b1']
    h = jnp.maximum(h, 0.0)
    h = rt(h) @ f32(p['w2']) + p['b2']
    h = jnp.maximum(h, 0.0)
    ma = rt(h) @ f32(p['w3']) + p['b3']
    m, a = ma[:, :Dp], ma[:, Dp:]
    u = (xq - m) * jnp.exp(-a)
    logdet = -jnp.sum(a, axis=-1, keepdims=True)
    return u[:, :D], logdet


if __name__ == "__main__":
    B, D, H = 8, 8, 32   # batch, num_inputs, num_hidden (small test shapes)

    key = jax.random.PRNGKey(0)
    k_x, k_p = jax.random.split(key)
    x = jax.random.normal(k_x, (B, D), jnp.float32)

    # --- float32 weights: tight numerical check ---
    params = init_made_params(k_p, D, H, weight_dtype=jnp.float32)
    u, logdet = made_forward(x, params)
    jax.block_until_ready((u, logdet))
    u_ref, ld_ref = made_forward_ref(x, params)
    assert u.shape == (B, D) and logdet.shape == (B, 1)
    assert jnp.allclose(u, u_ref, atol=1e-5, rtol=1e-5)
    assert jnp.allclose(logdet, ld_ref, atol=1e-5, rtol=1e-5)

    # --- bfloat16 weights + bf16-streamed x (halved weight/x DMA): loose check ---
    params_bf16 = init_made_params(k_p, D, H, weight_dtype=jnp.bfloat16)
    u_b, ld_b = made_forward(x, params_bf16)
    jax.block_until_ready((u_b, ld_b))
    u_rb, ld_rb = made_forward_ref(x, params_bf16)
    assert jnp.allclose(u_b, u_rb, atol=2e-2, rtol=2e-2)
    assert jnp.allclose(ld_b, ld_rb, atol=2e-2, rtol=2e-2)

    print("KERNEL_OK")
</pallas_src>

<mosaic_0001>
module attributes {stable_mosaic.version = 11 : i64} {
  func.func @made_kernel(%arg0: i32, %arg1: memref<8x128xf32, #tpu.memory_space<vmem>>, %arg2: memref<128x128xf32, #tpu.memory_space<vmem>>, %arg3: memref<1x128xf32, #tpu.memory_space<vmem>>, %arg4: memref<128x128xf32, #tpu.memory_space<vmem>>, %arg5: memref<1x128xf32, #tpu.memory_space<vmem>>, %arg6: memref<128x256xf32, #tpu.memory_space<vmem>>, %arg7: memref<1x256xf32, #tpu.memory_space<vmem>>, %arg8: memref<8x128xf32, #tpu.memory_space<vmem>>, %arg9: memref<8x128xf32, #tpu.memory_space<vmem>>) attributes {dimension_semantics = [#tpu.dimension_semantics<parallel>], iteration_bounds = array<i64: 1>, scalar_prefetch = 0 : i64, scratch_operands = 0 : i64, tpu.core_type = #tpu.core_type<tc>, window_params = [{transform_indices = @transform_0, window_bounds = array<i64: 8, 128>}, {pipeline_mode = #tpu.pipeline_mode<synchronous>, transform_indices = @transform_1, window_bounds = array<i64: 128, 128>}, {pipeline_mode = #tpu.pipeline_mode<synchronous>, transform_indices = @transform_2, window_bounds = array<i64: 1, 128>}, {pipeline_mode = #tpu.pipeline_mode<synchronous>, transform_indices = @transform_3, window_bounds = array<i64: 128, 128>}, {pipeline_mode = #tpu.pipeline_mode<synchronous>, transform_indices = @transform_4, window_bounds = array<i64: 1, 128>}, {pipeline_mode = #tpu.pipeline_mode<synchronous>, transform_indices = @transform_5, window_bounds = array<i64: 128, 256>}, {pipeline_mode = #tpu.pipeline_mode<synchronous>, transform_indices = @transform_6, window_bounds = array<i64: 1, 256>}, {transform_indices = @transform_7, window_bounds = array<i64: 8, 128>}, {transform_indices = @transform_8, window_bounds = array<i64: 8, 128>}]} {
    %c0 = arith.constant 0 : index
    %c0_0 = arith.constant 0 : index
    %0 = vector.load %arg1[%c0, %c0_0] : memref<8x128xf32, #tpu.memory_space<vmem>>, vector<8x128xf32>
    %c0_1 = arith.constant 0 : index
    %c0_2 = arith.constant 0 : index
    %1 = vector.load %arg2[%c0_1, %c0_2] : memref<128x128xf32, #tpu.memory_space<vmem>>, vector<128x128xf32>
    %cst = arith.constant dense<0.000000e+00> : vector<8x128xf32>
    %2 = tpu.matmul %0, %1, %cst {dimension_numbers = #tpu.dot_dimension_numbers<[1], [0], [0], [1], [0, 0, 1, 1], [], []>} : vector<8x128xf32>, vector<128x128xf32>, vector<8x128xf32> -> vector<8x128xf32>
    %c0_3 = arith.constant 0 : index
    %c0_4 = arith.constant 0 : index
    %3 = vector.load %arg3[%c0_3, %c0_4] : memref<1x128xf32, #tpu.memory_space<vmem>>, vector<1x128xf32>
    %4 = vector.broadcast %3 : vector<1x128xf32> to vector<8x128xf32>
    %5 = arith.addf %2, %4 : vector<8x128xf32>
    %cst_5 = arith.constant 0.000000e+00 : f32
    %6 = vector.broadcast %cst_5 : f32 to vector<8x128xf32>
    %7 = arith.maximumf %5, %6 : vector<8x128xf32>
    %c0_6 = arith.constant 0 : index
    %c0_7 = arith.constant 0 : index
    %8 = vector.load %arg4[%c0_6, %c0_7] : memref<128x128xf32, #tpu.memory_space<vmem>>, vector<128x128xf32>
    %cst_8 = arith.constant dense<0.000000e+00> : vector<8x128xf32>
    %9 = tpu.matmul %7, %8, %cst_8 {dimension_numbers = #tpu.dot_dimension_numbers<[1], [0], [0], [1], [0, 0, 1, 1], [], []>} : vector<8x128xf32>, vector<128x128xf32>, vector<8x128xf32> -> vector<8x128xf32>
    %c0_9 = arith.constant 0 : index
    %c0_10 = arith.constant 0 : index
    %10 = vector.load %arg5[%c0_9, %c0_10] : memref<1x128xf32, #tpu.memory_space<vmem>>, vector<1x128xf32>
    %11 = vector.broadcast %10 : vector<1x128xf32> to vector<8x128xf32>
    %12 = arith.addf %9, %11 : vector<8x128xf32>
    %cst_11 = arith.constant 0.000000e+00 : f32
    %13 = vector.broadcast %cst_11 : f32 to vector<8x128xf32>
    %14 = arith.maximumf %12, %13 : vector<8x128xf32>
    %c0_12 = arith.constant 0 : index
    %c0_13 = arith.constant 0 : index
    %15 = vector.load %arg6[%c0_12, %c0_13] : memref<128x256xf32, #tpu.memory_space<vmem>>, vector<128x256xf32>
    %cst_14 = arith.constant dense<0.000000e+00> : vector<8x256xf32>
    %16 = tpu.matmul %14, %15, %cst_14 {dimension_numbers = #tpu.dot_dimension_numbers<[1], [0], [0], [1], [0, 0, 1, 1], [], []>} : vector<8x128xf32>, vector<128x256xf32>, vector<8x256xf32> -> vector<8x256xf32>
    %c0_15 = arith.constant 0 : index
    %c0_16 = arith.constant 0 : index
    %17 = vector.load %arg7[%c0_15, %c0_16] : memref<1x256xf32, #tpu.memory_space<vmem>>, vector<1x256xf32>
    %18 = vector.broadcast %17 : vector<1x256xf32> to vector<8x256xf32>
    %19 = arith.addf %16, %18 : vector<8x256xf32>
    %20 = vector.extract_strided_slice %19 {offsets = [0, 0], sizes = [8, 128], strides = [1, 1]} : vector<8x256xf32> to vector<8x128xf32>
    %21 = vector.extract_strided_slice %19 {offsets = [0, 128], sizes = [8, 128], strides = [1, 1]} : vector<8x256xf32> to vector<8x128xf32>
    %22 = arith.subf %0, %20 : vector<8x128xf32>
    %cst_17 = arith.constant 0.000000e+00 : f32
    %23 = vector.broadcast %cst_17 : f32 to vector<8x128xf32>
    %24 = arith.subf %23, %21 : vector<8x128xf32>
    %25 = math.exp %24 : vector<8x128xf32>
    %26 = arith.mulf %22, %25 : vector<8x128xf32>
    %c0_18 = arith.constant 0 : index
    %c0_19 = arith.constant 0 : index
    %27 = vector.load %arg8[%c0_18, %c0_19] : memref<8x128xf32, #tpu.memory_space<vmem>>, vector<8x128xf32>
    tpu.vector_store %arg8[%c0_18, %c0_19], %26 {strides = array<i32>} : memref<8x128xf32, #tpu.memory_space<vmem>>, vector<8x128xf32>,
    %cst_20 = arith.constant dense<0.000000e+00> : vector<8xf32>
    %28 = vector.multi_reduction <add>, %21, %cst_20 [1] : vector<8x128xf32> to vector<8xf32>
    %29 = vector.shape_cast %28 : vector<8xf32> to vector<8x1xf32>
    %cst_21 = arith.constant 0.000000e+00 : f32
    %30 = vector.broadcast %cst_21 : f32 to vector<8x1xf32>
    %31 = arith.subf %30, %29 : vector<8x1xf32>
    %32 = vector.shape_cast %31 : vector<8x1xf32> to vector<8x1xf32>
    %33 = vector.broadcast %32 : vector<8x1xf32> to vector<8x128xf32>
    %c0_22 = arith.constant 0 : index
    %c0_23 = arith.constant 0 : index
    %34 = vector.load %arg9[%c0_22, %c0_23] : memref<8x128xf32, #tpu.memory_space<vmem>>, vector<8x128xf32>
    tpu.vector_store %arg9[%c0_22, %c0_23], %33 {strides = array<i32>} : memref<8x128xf32, #tpu.memory_space<vmem>>, vector<8x128xf32>,
    return
  }
  func.func @transform_0(%arg0: i32) -> (i32, i32) {
    %c0_i32 = arith.constant 0 : i32
    %c0_i32_0 = arith.constant 0 : i32
    return %arg0, %c0_i32 : i32, i32
  }
  func.func @transform_1(%arg0: i32) -> (i32, i32) {
    %c0_i32 = arith.constant 0 : i32
    %c0_i32_0 = arith.constant 0 : i32
    %c0_i32_1 = arith.constant 0 : i32
    return %c0_i32, %c0_i32_0 : i32, i32
  }
  func.func @transform_2(%arg0: i32) -> (i32, i32) {
    %c0_i32 = arith.constant 0 : i32
    %c0_i32_0 = arith.constant 0 : i32
    %c0_i32_1 = arith.constant 0 : i32
    return %c0_i32, %c0_i32_0 : i32, i32
  }
  func.func @transform_3(%arg0: i32) -> (i32, i32) {
    %c0_i32 = arith.constant 0 : i32
    %c0_i32_0 = arith.constant 0 : i32
    %c0_i32_1 = arith.constant 0 : i32
    return %c0_i32, %c0_i32_0 : i32, i32
  }
  func.func @transform_4(%arg0: i32) -> (i32, i32) {
    %c0_i32 = arith.constant 0 : i32
    %c0_i32_0 = arith.constant 0 : i32
    %c0_i32_1 = arith.constant 0 : i32
    return %c0_i32, %c0_i32_0 : i32, i32
  }
  func.func @transform_5(%arg0: i32) -> (i32, i32) {
    %c0_i32 = arith.constant 0 : i32
    %c0_i32_0 = arith.constant 0 : i32
    %c0_i32_1 = arith.constant 0 : i32
    return %c0_i32, %c0_i32_0 : i32, i32
  }
  func.func @transform_6(%arg0: i32) -> (i32, i32) {
    %c0_i32 = arith.constant 0 : i32
    %c0_i32_0 = arith.constant 0 : i32
    %c0_i32_1 = arith.constant 0 : i32
    return %c0_i32, %c0_i32_0 : i32, i32
  }
  func.func @transform_7(%arg0: i32) -> (i32, i32) {
    %c0_i32 = arith.constant 0 : i32
    %c0_i32_0 = arith.constant 0 : i32
    return %arg0, %c0_i32 : i32, i32
  }
  func.func @transform_8(%arg0: i32) -> (i32, i32) {
    %c0_i32 = arith.constant 0 : i32
    %c0_i32_0 = arith.constant 0 : i32
    return %arg0, %c0_i32 : i32, i32
  }
}

</mosaic_0001>

<bundles_post_ra>
// kernel: tpu_custom_call.1
= control target key start
LH: loop header
LB: loop body
LE: loop exit
PB: predicated region body
PF: predicated region fallthrough
CT: control target
= control target key end

     0   :  { %14 = vsyncpa [#allocation3], 0  ;;  %s939_s0 = inlined_call_operand.hbm [shape: f32[8,128], index: 0, kind: input, shape index: {}]   ;;  %s940_s1 = inlined_call_operand.hbm [shape: f32[128,128], index: 1, kind: input, shape index: {}]   ;;  %s941_s2 = inlined_call_operand.vmem [shape: f32[1,128], index: 2, kind: input, shape index: {}]   ;;  %s942_s3 = inlined_call_operand.hbm [shape: f32[128,128], index: 3, kind: input, shape index: {}]   ;;  %s943_s4 = inlined_call_operand.vmem [shape: f32[1,128], index: 4, kind: input, shape index: {}]   ;;  %s944_s5 = inlined_call_operand.hbm [shape: f32[128,256], index: 5, kind: input, shape index: {}]   ;;  %s945_s6 = inlined_call_operand.vmem [shape: f32[1,256], index: 6, kind: input, shape index: {}]   ;;  %s946_s7 = inlined_call_operand.hbm [shape: f32[8,128], index: 7, kind: output, shape index: {0}]   ;;  %s947_s8 = inlined_call_operand.hbm [shape: f32[8,128], index: 8, kind: output, shape index: {1}]  }
   0x1   :  { %15 = vsyncpa [#allocation6], 0 }
   0x2   :  { %16 = vsyncpa [#allocation9], 0 }
   0x3   :  { %17 = vsyncpa [#allocation4], 0 }
   0x4   :  { %18 = vsyncpa [#allocation12], 0  ;;  %s771_s27 = smov [#allocation5]   ;;  %s629_s9 = scalar_lea.hbm %s940_s1, 2048 }
   0x5   :  { %s34_s28 = sshll.u32 %s771_s27, 4  ;;  %p630_p0 = scmp.ne.s32.totalorder %s940_s1, %s629_s9  ;;  %s35_s28 = int_to_ptr.vmem [resolvable:$true] %s34_s28 }
   0x6   :  { %p633_p1 = scmp.lt.u32.totalorder %s629_s9, %s940_s1 }
   0x8   :  { %p635_p2 = pnand %p633_p1, %p630_p0 }
   0xa   :  { %638 = shalt.err (!%p635_p2)
}
   0xb   :  { %s639_s14 = scalar_lea.vmem %s35_s28, 2048  ;;  %p644_p4 = scmp.lt.s32.totalorder %s35_s28, %s35_s28 }
   0xc   :  { %p640_p3 = scmp.ne.s32.totalorder %s35_s28, %s639_s14  ;;  %p645_p5 = scmp.lt.s32.totalorder %s639_s14, %s639_s14 }
   0xe   :  { %p646_p6 = por %p645_p5, %p644_p4 }
  0x10   :  { %p647_p7 = pnand %p646_p6, %p640_p3 }
  0x12   :  { %650 = shalt.err (!%p647_p7)
}
  0x13   :  { %s772_s15 = smov 128   ;;  %s773_s16 = smov 8  }
  0x14   :  { %40 = dma.hbm_to_vmem [thread:$0]  %s940_s1, 2048, %s35_s28, [#allocation6], %s772_s15, %s772_s15, %s773_s16  }
  0x15   :  { %s774_s19 = smov [#allocation2]   ;;  %s775_s21 = smov [#allocation7]  }
  0x16   :  { %s25_s20 = sshll.u32 %s774_s19, 4  ;;  %s48_s22 = sshll.u32 %s775_s21, 4  ;;  %s26_s20 = int_to_ptr.vmem [resolvable:$true] %s25_s20  ;;  %s49_s22 = int_to_ptr.vmem [resolvable:$true] %s48_s22 }
  0x17   :  { %s651_s25 = scalar_lea.hbm %s939_s0, 128 }
  0x18   :  { %p652_p8 = scmp.ne.s32.totalorder %s939_s0, %s651_s25  ;;  %p655_p9 = scmp.lt.u32.totalorder %s651_s25, %s939_s0 }
  0x1a   :  { %p657_p10 = pnand %p655_p9, %p652_p8 }
  0x1c   :  { %660 = shalt.err (!%p657_p10)
}
  0x1d   :  { %s661_s1 = scalar_lea.vmem %s26_s20, 128  ;;  %p666_p12 = scmp.lt.s32.totalorder %s26_s20, %s26_s20 }
  0x1e   :  { %p662_p11 = scmp.ne.s32.totalorder %s26_s20, %s661_s1  ;;  %p667_p13 = scmp.lt.s32.totalorder %s661_s1, %s661_s1 }
  0x20   :  { %p668_p0 = por %p667_p13, %p666_p12 }
  0x22   :  { %p669_p1 = pnand %p668_p0, %p662_p11 }
  0x24   :  { %672 = shalt.err (!%p669_p1)
}
  0x25   :  { %28 = dma.hbm_to_vmem [thread:$0]  %s939_s0, 128, %s26_s20, [#allocation3]  }
  0x26   :  { %s673_s12 = scalar_lea.hbm %s942_s3, 2048 }
  0x27   :  { %p674_p2 = scmp.ne.s32.totalorder %s942_s3, %s673_s12  ;;  %p677_p3 = scmp.lt.u32.totalorder %s673_s12, %s942_s3 }
  0x29   :  { %p679_p4 = pnand %p677_p3, %p674_p2 }
  0x2b   :  { %682 = shalt.err (!%p679_p4)
}
  0x2c   :  { %s683_s19 = scalar_lea.vmem %s49_s22, 2048  ;;  %p688_p6 = scmp.lt.s32.totalorder %s49_s22, %s49_s22 }
  0x2d   :  { %p684_p5 = scmp.ne.s32.totalorder %s49_s22, %s683_s19  ;;  %p689_p7 = scmp.lt.s32.totalorder %s683_s19, %s683_s19 }
  0x2f   :  { %p690_p8 = por %p689_p7, %p688_p6 }
  0x31   :  { %p691_p9 = pnand %p690_p8, %p684_p5 }
  0x33   :  { %694 = shalt.err (!%p691_p9)
}
  0x34   :  { %54 = dma.hbm_to_vmem [thread:$0]  %s942_s3, 2048, %s49_s22, [#allocation6], %s772_s15, %s772_s15, %s773_s16  }
  0x35   :  { %s776_s21 = smov [#allocation8]   ;;  %s695_s26 = scalar_lea.hbm %s944_s5, 4096 }
  0x36   :  { %s62_s23 = sshll.u32 %s776_s21, 4  ;;  %p696_p10 = scmp.ne.s32.totalorder %s944_s5, %s695_s26  ;;  %s63_s23 = int_to_ptr.vmem [resolvable:$true] %s62_s23 }
  0x37   :  { %p699_p11 = scmp.lt.u32.totalorder %s695_s26, %s944_s5 }
  0x39   :  { %p701_p12 = pnand %p699_p11, %p696_p10 }
  0x3b   :  { %704 = shalt.err (!%p701_p12)
}
  0x3c   :  { %s705_s28 = scalar_lea.vmem %s63_s23, 4096  ;;  %p710_p0 = scmp.lt.s32.totalorder %s63_s23, %s63_s23 }
  0x3d   :  { %p706_p13 = scmp.ne.s32.totalorder %s63_s23, %s705_s28  ;;  %p711_p1 = scmp.lt.s32.totalorder %s705_s28, %s705_s28 }
  0x3f   :  { %p712_p2 = por %p711_p1, %p710_p0 }
  0x41   :  { %p713_p3 = pnand %p712_p2, %p706_p13 }
  0x43   :  { %716 = shalt.err (!%p713_p3)
}
  0x44   :  { %s777_s3 = smov 256   ;;  %s778_s15 = smov 16  }
  0x45   :  { %68 = dma.hbm_to_vmem [thread:$0]  %s944_s5, 4096, %s63_s23, [#allocation9], %s777_s3, %s777_s3, %s778_s15  }
  0x46   :  { %761 = dma.done.wait [#allocation3], 128  }
  0x47   :  { %762 = vsyncadd [#allocation3], 4294967168 }
  0x48   :  { %763 = dma.done.wait [#allocation6], 4096  }
  0x49   :  { %764 = vsyncadd [#allocation6], 4294963200 }
  0x4a   :  { %765 = dma.done.wait [#allocation9], 4096  }
  0x4b   :  { %766 = vsyncadd [#allocation9], 4294963200  ;;  %v779_v0 = vmov 0.0|0.0   ;;  %vm780_vm0 = vmmov 0   ;;  %v781_v1 = vmov 0.0   ;;  %v84_v2 = vld [vmem:[#allocation5] sm:$0xff] }
  0x4c   :  { %534 = vmatprep.subr.bf16.mxu0 %v779_v0  ;;  %496 = vmatprep.mubr.msk.f32.mxu0 %vm780_vm0, %v781_v1  ;;  %v85_v3 = vld [vmem:[#allocation5 + $0x8] sm:$0xff]  ;;  %v86_v4 = vld [vmem:[#allocation5 + $0x10] sm:$0xff]  ;;  %v87_v6 = vld [vmem:[#allocation5 + $0x18] sm:$0xff] }
  0x4d   :  { %558 = vmatprep.subr.bf16.mxu1 %v779_v0  ;;  %531 = vmatprep.mubr.msk.f32.mxu1 %vm780_vm0, %v781_v1  ;;  %v535_v5 = vpack.c.bf16 %v85_v3, %v84_v2  ;;  %v538_v7 = vpack.c.bf16 %v87_v6, %v86_v4  ;;  %v88_v8 = vld [vmem:[#allocation5 + $0x20] sm:$0xff]  ;;  %v89_v9 = vld [vmem:[#allocation5 + $0x28] sm:$0xff]  ;;  %v180_v12 = vld [vmem:[#allocation7 + $0x10] sm:$0xff] }
  0x4e   :  { %v178_v10 = vld [vmem:[#allocation7] sm:$0xff]  ;;  %v179_v11 = vld [vmem:[#allocation7 + $0x8] sm:$0xff]  ;;  %v181_v13 = vld [vmem:[#allocation7 + $0x18] sm:$0xff]  ;;  %v541_v14 = vpack.c.bf16 %v89_v9, %v88_v8 }
  0x4f   :  { %536 = vmatpush3.bf16.msra.mxu0 %v535_v5  ;;  %v559_v15 = vpack.c.bf16 %v179_v11, %v178_v10  ;;  %v90_v16 = vld [vmem:[#allocation5 + $0x30] sm:$0xff]  ;;  %v91_v17 = vld [vmem:[#allocation5 + $0x38] sm:$0xff]  ;;  %v562_v18 = vpack.c.bf16 %v181_v13, %v180_v12  ;;  %v182_v19 = vld [vmem:[#allocation7 + $0x20] sm:$0xff] }
  0x50   :  { %537 = vmatprep.subr.bf16.mxu0 %v779_v0  ;;  %v183_v20 = vld [vmem:[#allocation7 + $0x28] sm:$0xff]  ;;  %v544_v21 = vpack.c.bf16 %v91_v17, %v90_v16  ;;  %v92_v22 = vld [vmem:[#allocation5 + $0x40] sm:$0xff]  ;;  %v184_v25 = vld [vmem:[#allocation7 + $0x30] sm:$0xff] }
  0x51   :  { %560 = vmatpush3.bf16.msra.mxu1 %v559_v15  ;;  %v93_v23 = vld [vmem:[#allocation5 + $0x48] sm:$0xff]  ;;  %v565_v24 = vpack.c.bf16 %v183_v20, %v182_v19  ;;  %v185_v26 = vld [vmem:[#allocation7 + $0x38] sm:$0xff]  ;;  %v94_v28 = vld [vmem:[#allocation5 + $0x50] sm:$0xff] }
  0x52   :  { %561 = vmatprep.subr.bf16.mxu1 %v779_v0  ;;  %v547_v27 = vpack.c.bf16 %v93_v23, %v92_v22  ;;  %v95_v29 = vld [vmem:[#allocation5 + $0x58] sm:$0xff]  ;;  %v568_v30 = vpack.c.bf16 %v185_v26, %v184_v25  ;;  %v186_v31 = vld [vmem:[#allocation7 + $0x40] sm:$0xff]  ;;  %v187_v32 = vld [vmem:[#allocation7 + $0x48] sm:$0xff] }
  0x53   :  { %539 = vmatpush3.bf16.msra.mxu0 %v538_v7  ;;  %v550_v33 = vpack.c.bf16 %v95_v29, %v94_v28  ;;  %v96_v34 = vld [vmem:[#allocation5 + $0x60] sm:$0xff]  ;;  %v97_v35 = vld [vmem:[#allocation5 + $0x68] sm:$0xff]  ;;  %v571_v36 = vpack.c.bf16 %v187_v32, %v186_v31  ;;  %v188_v37 = vld [vmem:[#allocation7 + $0x50] sm:$0xff] }
  0x54   :  { %540 = vmatprep.subr.bf16.mxu0 %v779_v0  ;;  %v189_v38 = vld [vmem:[#allocation7 + $0x58] sm:$0xff]  ;;  %v553_v39 = vpack.c.bf16 %v97_v35, %v96_v34  ;;  %v98_v40 = vld [vmem:[#allocation5 + $0x70] sm:$0xff]  ;;  %v190_v43 = vld [vmem:[#allocation7 + $0x60] sm:$0xff] }
  0x55   :  { %563 = vmatpush3.bf16.msra.mxu1 %v562_v18  ;;  %v99_v41 = vld [vmem:[#allocation5 + $0x78] sm:$0xff]  ;;  %v574_v42 = vpack.c.bf16 %v189_v38, %v188_v37  ;;  %v191_v44 = vld [vmem:[#allocation7 + $0x68] sm:$0xff]  ;;  %v192_v48 = vld [vmem:[#allocation7 + $0x70] sm:$0xff] }
  0x56   :  { %564 = vmatprep.subr.bf16.mxu1 %v779_v0  ;;  %v556_v45 = vpack.c.bf16 %v99_v41, %v98_v40  ;;  %v577_v46 = vpack.c.bf16 %v191_v44, %v190_v43  ;;  %v900_v47 = vld [vmem:[#allocation2] sm:$0xff]  ;;  %v273_v51 = vld [vmem:[#allocation8 + $0x8] sm:$0xff]  ;;  %v272_v53 = vld [vmem:[#allocation8] sm:$0xff] }
  0x57   :  { %542 = vmatpush3.bf16.msra.mxu0 %v541_v14  ;;  %v193_v49 = vld [vmem:[#allocation7 + $0x78] sm:$0xff]  ;;  %v274_v55 = vld [vmem:[#allocation8 + $0x10] sm:$0xff]  ;;  %v277_v56 = vld [vmem:[#allocation8 + $0x28] sm:$0xff] }
  0x58   :  { %543 = vmatprep.subr.bf16.mxu0 %v779_v0  ;;  %v580_v50 = vpack.c.bf16 %v193_v49, %v192_v48  ;;  %v275_v52 = vld [vmem:[#allocation8 + $0x18] sm:$0xff]  ;;  %v584_v58 = vpack.c.bf16 %v274_v55, %v272_v53  ;;  %v276_v60 = vld [vmem:[#allocation8 + $0x20] sm:$0xff]  ;;  %v278_v61 = vld [vmem:[#allocation8 + $0x30] sm:$0xff] }
  0x59   :  { %566 = vmatpush3.bf16.msra.mxu1 %v565_v24  ;;  %v582_v54 = vpack.c.bf16 %v275_v52, %v273_v51  ;;  %v279_v57 = vld [vmem:[#allocation8 + $0x38] sm:$0xff]  ;;  %v281_v62 = vld [vmem:[#allocation8 + $0x48] sm:$0xff]  ;;  %v280_v2 = vld [vmem:[#allocation8 + $0x40] sm:$0xff] }
  0x5a   :  { %567 = vmatprep.subr.bf16.mxu1 %v779_v0  ;;  %v586_v59 = vpack.c.bf16 %v279_v57, %v277_v56  ;;  %v283_v63 = vld [vmem:[#allocation8 + $0x58] sm:$0xff]  ;;  %v282_v3 = vld [vmem:[#allocation8 + $0x50] sm:$0xff]  ;;  %v285_v4 = vld [vmem:[#allocation8 + $0x68] sm:$0xff] }
  0x5b   :  { %545 = vmatpush3.bf16.msra.mxu0 %v544_v21  ;;  %v287_v5 = vld [vmem:[#allocation8 + $0x78] sm:$0xff]  ;;  %v592_v6 = vpack.c.bf16 %v282_v3, %v280_v2  ;;  %v284_v8 = vld [vmem:[#allocation8 + $0x60] sm:$0xff]  ;;  %v286_v9 = vld [vmem:[#allocation8 + $0x70] sm:$0xff] }
  0x5c   :  { %546 = vmatprep.subr.bf16.mxu0 %v779_v0  ;;  %v594_v7 = vpack.c.bf16 %v287_v5, %v285_v4  ;;  %v289_v10 = vld [vmem:[#allocation8 + $0x88] sm:$0xff]  ;;  %v291_v11 = vld [vmem:[#allocation8 + $0x98] sm:$0xff]  ;;  %v596_v12 = vpack.c.bf16 %v286_v9, %v284_v8  ;;  %v288_v14 = vld [vmem:[#allocation8 + $0x80] sm:$0xff] }
  0x5d   :  { %569 = vmatpush3.bf16.msra.mxu1 %v568_v30  ;;  %v598_v13 = vpack.c.bf16 %v291_v11, %v289_v10  ;;  %v290_v15 = vld [vmem:[#allocation8 + $0x90] sm:$0xff]  ;;  %v293_v16 = vld [vmem:[#allocation8 + $0xa8] sm:$0xff]  ;;  %v295_v17 = vld [vmem:[#allocation8 + $0xb8] sm:$0xff] }
  0x5e   :  { %570 = vmatprep.subr.bf16.mxu1 %v779_v0  ;;  %v600_v18 = vpack.c.bf16 %v290_v15, %v288_v14  ;;  %v602_v19 = vpack.c.bf16 %v295_v17, %v293_v16  ;;  %v292_v20 = vld [vmem:[#allocation8 + $0xa0] sm:$0xff]  ;;  %v294_v21 = vld [vmem:[#allocation8 + $0xb0] sm:$0xff]  ;;  %v297_v22 = vld [vmem:[#allocation8 + $0xc8] sm:$0xff] }
  0x5f   :  { %548 = vmatpush3.bf16.msra.mxu0 %v547_v27  ;;  %v299_v23 = vld [vmem:[#allocation8 + $0xd8] sm:$0xff]  ;;  %v604_v24 = vpack.c.bf16 %v294_v21, %v292_v20  ;;  %v296_v26 = vld [vmem:[#allocation8 + $0xc0] sm:$0xff]  ;;  %v298_v27 = vld [vmem:[#allocation8 + $0xd0] sm:$0xff] }
  0x60   :  { %549 = vmatprep.subr.bf16.mxu0 %v779_v0  ;;  %v606_v25 = vpack.c.bf16 %v299_v23, %v297_v22  ;;  %v608_v28 = vpack.c.bf16 %v298_v27, %v296_v26  ;;  %v428_v29 = vld [vmem:[%s941_s2] ss:$0 sm:$0xff]  ;;  %v301_v34 = vld [vmem:[#allocation8 + $0xe8] sm:$0xff]  ;;  %v300_v37 = vld [vmem:[#allocation8 + $0xe0] sm:$0xff] }
  0x61   :  { %572 = vmatpush3.bf16.msra.mxu1 %v571_v36  ;;  %v303_v35 = vld [vmem:[#allocation8 + $0xf8] sm:$0xff]  ;;  %v302_v38 = vld [vmem:[#allocation8 + $0xf0] sm:$0xff] }
  0x62   :  { %573 = vmatprep.subr.bf16.mxu1 %v779_v0  ;;  %v610_v36 = vpack.c.bf16 %v303_v35, %v301_v34  ;;  %v429_v40 = vld [vmem:[%s943_s4] ss:$0 sm:$0xff]  ;;  %s782_s4 = smov [#allocation10]  }
  0x63   :  { %551 = vmatpush3.bf16.msra.mxu0 %v550_v33  ;;  %v304_v49 = vld [vmem:[%s945_s6] sm:$0x3]  ;;  %s403_s13 = sshll.u32 %s782_s4, 4  ;;  %s404_s13 = int_to_ptr.vmem [resolvable:$true] %s403_s13 }
  0x64   :  { %552 = vmatprep.subr.bf16.mxu0 %v779_v0  ;;  %s717_s6 = scalar_lea.vmem %s404_s13, 128  ;;  %p722_p5 = scmp.lt.s32.totalorder %s404_s13, %s404_s13 }
  0x65   :  { %575 = vmatpush3.bf16.msra.mxu1 %v574_v42  ;;  %p718_p4 = scmp.ne.s32.totalorder %s404_s13, %s717_s6  ;;  %p723_p6 = scmp.lt.s32.totalorder %s717_s6, %s717_s6 }
  0x66   :  { %576 = vmatprep.subr.bf16.mxu1 %v779_v0 }
  0x67   :  { %554 = vmatpush3.bf16.msra.mxu0 %v553_v39  ;;  %v612_v39 = vpack.c.bf16 %v302_v38, %v300_v37  ;;  %p724_p7 = por %p723_p6, %p722_p5 }
  0x68   :  { %555 = vmatprep.subr.bf16.mxu0 %v779_v0 }
  0x69   :  { %578 = vmatpush3.bf16.msra.mxu1 %v577_v46  ;;  %p725_p8 = pnand %p724_p7, %p718_p4 }
  0x6a   :  { %579 = vmatprep.subr.bf16.mxu1 %v779_v0  ;;  %v588_v0 = vpack.c.bf16 %v278_v61, %v276_v60 }
  0x6b   :  { %557 = vmatpush3.bf16.msra.mxu0 %v556_v45  ;;  %v306_v45 = vlaneseq }
  0x6c   :  { %583 = vmatprep.subr.bf16.mxu0 %v582_v54 }
  0x6d   :  { %581 = vmatpush3.bf16.msra.mxu1 %v580_v50  ;;  %v307_v46 = vshrl.u32 %v306_v45, 7 }
  0x6e   :  { %497 = vmatmul.mubr.f32.vlgmr.msra.gmra.mrb[0].mxu0 %v900_v47 }
  0x6f   :  { %380 = vmatprep.mubr.f32.mxu0 %v781_v1  ;;  %585 = vmatpush1.bf16.msra.mxu0 %v584_v58  ;;  %v590_v1 = vpack.c.bf16 %v283_v63, %v281_v62  ;;  %v312_v48 = vsub.s32 1, %v307_v46  ;;  %v308_v55 = vsub.s32 0, %v307_v46 }
  0x70   :  { %587 = vmatprep.subr.bf16.mxu0 %v586_v59 }
  0x71   :  { %v313_v50 = vrot.slane %v304_v49, %v312_v48  ;;  %v309_v57 = vrot.slane %v304_v49, %v308_v55 }
  0x73   :  { %589 = vmatpush1.bf16.msra.mxu0 %v588_v0 }
  0x74   :  { %591 = vmatprep.subr.bf16.mxu0 %v590_v1 }
  0x77   :  { %593 = vmatpush1.bf16.msra.mxu0 %v592_v6 }
  0x78   :  { %595 = vmatprep.subr.bf16.mxu0 %v594_v7 }
  0x7b   :  { %597 = vmatpush1.bf16.msra.mxu0 %v596_v12 }
  0x7c   :  { %599 = vmatprep.subr.bf16.mxu0 %v598_v13 }
  0x7f   :  { %601 = vmatpush1.bf16.msra.mxu0 %v600_v18 }
  0x80   :  { %603 = vmatprep.subr.bf16.mxu0 %v602_v19 }
  0x83   :  { %605 = vmatpush1.bf16.msra.mxu0 %v604_v24 }
  0x84   :  { %607 = vmatprep.subr.bf16.mxu0 %v606_v25 }
  0x87   :  { %609 = vmatpush1.bf16.msra.mxu0 %v608_v28 }
  0x88   :  { %611 = vmatprep.subr.bf16.mxu0 %v610_v36 }
  0x8b   :  { %613 = vmatpush1.bf16.msra.mxu0 %v612_v39 }
 0x141   :  { %v173_v30 = vpop.f32.mrb[0].mxu0 }
 0x142   :  { %v174_v31 = vadd.f32 %v428_v29, %v173_v30  ;;  %v498_v32 = vpop.f32.mrb[1].mxu0 }
 0x144   :  { %v177_v33 = vmax.f32 %v174_v31, 0.0 }
 0x146   :  { %532 = vmatmul.mubr.f32.vlgmr.msra.gmra.mrb[0].mxu1 %v177_v33 }
 0x219   :  { %v267_v41 = vpop.f32.mrb[0].mxu1 }
 0x21a   :  { %v268_v42 = vadd.f32 %v429_v40, %v267_v41  ;;  %v533_v43 = vpop.f32.mrb[1].mxu1 }
 0x21c   :  { %v271_v44 = vmax.f32 %v268_v42, 0.0 }
 0x21e   :  { %381 = vmatmul.mubr.f32.vlgmr.msra.gmra.mrb[2].mxu0 %v271_v44 }
 0x2f1   :  { %v382_v51 = vpop.f32.mrb[2].mxu0 }
 0x2f2   :  { %v384_v52 = vpop.f32.mrb[3].mxu0  ;;  %v383_v58 = vadd.f32 %v382_v51, %v309_v57 }
 0x2f3   :  { %v385_v53 = vadd.f32 %v384_v52, %v313_v50 }
 0x2f4   :  { %v387_v59 = vsub.f32 %v900_v47, %v383_v58 }
 0x2f5   :  { %v388_v54 = vsub.f32 0.0, %v385_v53  ;;  %393 = vadd.xlane.f32.xlu0 %v385_v53 }
 0x2f7   :  { %v389_v56 = vmul.f32 1.442695, %v388_v54 }
 0x2f9   :  { %627 = vpow2.f32 %v389_v56 }
 0x303   :  { %v628_v60 = vpop.eup %627 }
 0x304   :  { %v391_v61 = vmul.f32 %v628_v60, %v387_v59 }
 0x306   :  { %392 = vst [vmem:[#allocation10] sm:$0xff] %v391_v61 }
 0x307   :  { %728 = shalt.err (!%p725_p8)
}
 0x308   :  { %s729_s18 = scalar_lea.hbm %s946_s7, 128 }
 0x309   :  { %p730_p9 = scmp.ne.s32.totalorder %s946_s7, %s729_s18  ;;  %p733_p10 = scmp.lt.u32.totalorder %s729_s18, %s946_s7 }
 0x30b   :  { %p735_p11 = pnand %p733_p10, %p730_p9 }
 0x30d   :  { %738 = shalt.err (!%p735_p11)
}
 0x30e   :  { %406 = dma.vmem_to_hbm [thread:$0]  %s404_s13, 128, %s946_s7, [#allocation4]  }
 0x30f   :  { %s783_s25 = smov [#allocation11]  }
 0x310   :  { %s413_s26 = sshll.u32 %s783_s25, 4  ;;  %s414_s26 = int_to_ptr.vmem [resolvable:$true] %s413_s26 }
 0x311   :  { %s739_s27 = scalar_lea.vmem %s414_s26, 128  ;;  %p744_p13 = scmp.lt.s32.totalorder %s414_s26, %s414_s26 }
 0x312   :  { %p740_p12 = scmp.ne.s32.totalorder %s414_s26, %s739_s27  ;;  %p745_p0 = scmp.lt.s32.totalorder %s739_s27, %s739_s27 }
 0x314   :  { %p746_p1 = por %p745_p0, %p744_p13 }
 0x316   :  { %p747_p2 = pnand %p746_p1, %p740_p12 }
 0x382   :  { %v394_v47 = vpop.xlane.xlu0 %393 }
 0x383   :  { %v395_v62 = vsub.f32 0.0, %v394_v47 }
 0x385   :  { %396 = vst [vmem:[#allocation11] sm:$0xff] %v395_v62 }
 0x386   :  { %750 = shalt.err (!%p747_p2)
}
 0x387   :  { %s751_s1 = scalar_lea.hbm %s947_s8, 128 }
 0x388   :  { %p752_p3 = scmp.ne.s32.totalorder %s947_s8, %s751_s1  ;;  %p755_p4 = scmp.lt.u32.totalorder %s751_s1, %s947_s8 }
 0x38a   :  { %p757_p5 = pnand %p755_p4, %p752_p3 }
 0x38c   :  { %760 = shalt.err (!%p757_p5)
}
 0x38d   :  { %416 = dma.vmem_to_hbm [thread:$0]  %s414_s26, 128, %s947_s8, [#allocation12]  }
 0x38e   :  { %767 = dma.done.wait [#allocation4], 128  }
 0x38f   :  { %768 = vsyncadd [#allocation4], 4294967168 }
 0x390   :  { %769 = dma.done.wait [#allocation12], 128  }
 0x391   :  { %770 = vsyncadd [#allocation12], 4294967168 }
 0x392   :  { %423 = vsyncpa [#allocation3], 1 }
 0x393   :  { %424 = vsyncpa [#allocation6], 1 }
 0x394   :  { %425 = vsyncpa [#allocation9], 1 }
 0x395   :  { %426 = vsyncpa [#allocation4], 1 }
 0x396   :  { %427 = vsyncpa [#allocation12], 1 }

</bundles_post_ra>
